<compile_context>
chip_gen: v5e
topology: v5e:2x2
jax: 0.10.0
libtpu: 0.0.40
codegen_flags: <defaults>
</compile_context>

<pallas_src>
import functools

import numpy as np
import jax
import jax.numpy as jnp
from jax.experimental import pallas as pl
from jax.experimental.pallas import tpu as pltpu


# ---------------------------------------------------------------------------
# Plain-Python glue mirroring SparseyLayer.__init__ (geometry / connectivity)
# ---------------------------------------------------------------------------
def compute_mac_positions(num_macs, rows, cols, layout):
    positions = []
    global_col_offset = 0.5 if layout == "hex" else 0
    grid_col_spacing = 0.0
    if rows == 1:
        row_locs = [0.5]
    else:
        row_sp = 1 / (rows - 1)
        row_locs = [i * row_sp for i in range(rows)]
    if cols == 1:
        col_locs = [0.5]
    else:
        grid_col_spacing = 1 / (cols - 1)
        col_locs = [i * grid_col_spacing for i in range(cols)]
    for i in range(num_macs):
        positions.append(
            (row_locs[i // cols],
             col_locs[i % cols] + global_col_offset * (i % rows % 2) * grid_col_spacing))
    return positions


def find_connected_macs(mac_positions, prev_positions, prev_num_macs, rf_size):
    connections, rf_sizes, max_len = [], [], 0
    for p in mac_positions:
        conn = [idx for idx, q in enumerate(prev_positions)
                if (abs(p[0] - q[0]) ** 2 + abs(p[1] - q[1]) ** 2) ** 0.5 <= rf_size]
        connections.append(conn)
        max_len = max(max_len, len(conn))
    for c in connections:
        rf_sizes.append(len(c))
        while len(c) < max_len:
            c.append(prev_num_macs)  # points at the zero "phantom" prev-MAC row
    return np.asarray(connections, np.int32), np.asarray(rf_sizes, np.float32)


# ---------------------------------------------------------------------------
# Pallas kernel: G MACs per grid step
# ---------------------------------------------------------------------------
def sparsey_kernel(inp_ref, w_ref, act_ref, out_ref, *, G, num_cms, num_neurons):
    """inp_ref: (G, B_pad, K)  w_ref: (G, K, F)  act_ref: (1, B_pad, G)
    out_ref: (B_pad, G*F)  --  lanes [g*F, (g+1)*F) hold MAC g of this block."""
    F = num_cms * num_neurons
    L = G * F
    act = act_ref[0]                                       # (B_pad, G) f32
    b_pad = act.shape[0]

    # --- G MXU matmuls assembled once into the full lane-dense raw tile -----
    # NOTE: the reference divides raw by num_active_inputs before the argmax; division
    # by a positive per-row scalar cannot change the argmax, and the nact==0 row is
    # already all-zero (matching nan_to_num -> argmax == 0), so it is omitted.
    raw = jnp.concatenate(
        [jnp.dot(inp_ref[g], w_ref[g], preferred_element_type=jnp.float32)
         for g in range(G)], axis=1)                       # (B_pad, L) f32

    # --- per-CM argmax one-hot, computed ONCE over the whole tile ------------
    lane = jax.lax.broadcasted_iota(jnp.int32, (b_pad, L), 1)
    pos = lane % num_neurons                               # position inside a CM segment

    def segment_reduce(x, op, identity):
        # Hillis-Steele prefix pass within each aligned num_neurons-wide segment:
        # x[i] <- op over [segment_start, i].
        s = 1
        while s < num_neurons:
            prev = jnp.roll(x, s, axis=1)                  # prev[i] = x[i - s]
            x = op(x, jnp.where(pos >= s, prev, identity))
            s *= 2
        # Suffix pass: broadcast the segment total (held at pos == nn-1) back to all
        # positions (prefix array is monotone under op, so the suffix op == the total).
        s = 1
        while s < num_neurons:
            nxt = jnp.roll(x, -s, axis=1)                  # nxt[i] = x[i + s]
            x = op(x, jnp.where(pos + s < num_neurons, nxt, identity))
            s *= 2
        return x

    seg_max = segment_reduce(raw, jnp.maximum, -jnp.inf)
    # first-index-wins argmax (matches torch.argmax)
    winner = segment_reduce(jnp.where(raw == seg_max, pos, num_neurons),
                            jnp.minimum, num_neurons)
    onehot = (pos == winner).astype(jnp.float32)           # (B_pad, L)

    # --- per-(batch, MAC) activity mask: one broadcast multiply --------------
    mask = jnp.concatenate(
        [jnp.broadcast_to(act[:, g:g + 1], (b_pad, F)) for g in range(G)], axis=1)
    out_ref[...] = (onehot * mask).astype(out_ref.dtype)


# ---------------------------------------------------------------------------
# Tiling / VMEM heuristics
# ---------------------------------------------------------------------------
def _vmem_budgets():
    """(vmem_limit_bytes, per-step tile budget), generation aware."""
    try:
        cap = int(pltpu.get_tpu_info().vmem_capacity_bytes)
    except Exception:
        cap = 0
    if cap >= 128 * 1024 * 1024:                 # v5e / v6e: 128 MiB physical
        return 64 * 1024 * 1024, 24 * 1024 * 1024
    # v7x (64 MiB per TensorCore) or unknown / interpret: stay conservative.
    return 48 * 1024 * 1024, 16 * 1024 * 1024


def _choose_macs_per_step(num_macs, b_pad, K, F, in_bytes, out_bytes, vmem_budget):
    """Pick G = MACs per grid step.  num_macs is padded up to a multiple of G with
    phantom MACs, so awkward / prime num_macs never collapses to G=1."""
    def tile_bytes(g):          # everything BlockSpec double-buffers for one step
        return 2 * (g * b_pad * K * in_bytes      # input tile
                    + g * K * F * in_bytes        # weight tile
                    + b_pad * g * 4               # activity-mask tile
                    + b_pad * g * F * out_bytes)  # output tile

    best_g, best_key = 1, None
    for g in range(1, num_macs + 1):
        if g > 1 and tile_bytes(g) > vmem_budget:
            continue
        nb = -(-num_macs // g)
        padded = nb * g
        key = (
            (g * F) % 128 == 0 or nb == 1,            # lane-dense (unmasked) stores
            (padded - num_macs) * 4 <= num_macs,      # <= 25% phantom-weight DMA waste
            nb >= 2,                                  # keep pipeline / megacore busy
            g,                                        # then: as large as possible
            nb % 2 == 0,                              # tie-break: even split over v7x's 2 TCs
        )
        if best_key is None or key > best_key:
            best_key, best_g = key, g
    return best_g


# ---------------------------------------------------------------------------
# Wrapper
# ---------------------------------------------------------------------------
def sparsey_layer_forward(x, weights, input_connections, thr_min, thr_max,
                          num_cms, num_neurons, *, macs_per_step=None,
                          out_dtype=jnp.float32):
    """x: (B, prev_num_macs, prev_F) -> (B, num_macs, num_cms*num_neurons), eval mode."""
    B, _, prev_F = x.shape
    num_macs, rf = input_connections.shape
    K = rf * prev_F
    F = num_cms * num_neurons
    assert weights.shape == (num_macs, K, F)

    # Batch padded to a sublane multiple so MXU rows / vreg sublanes aren't wasted.
    B_pad = max(8, ((B + 7) // 8) * 8)

    # Receptive-field gather (zero "phantom" prev-MAC row for padded connections), MAC-major.
    x_pad = jnp.concatenate([x, jnp.zeros((B, 1, prev_F), x.dtype)], axis=1)
    mac_inputs = jnp.transpose(x_pad[:, input_connections], (1, 0, 2, 3))
    mac_inputs = mac_inputs.reshape(num_macs, B, K)
    if B_pad != B:
        mac_inputs = jnp.pad(mac_inputs, ((0, 0), (0, B_pad - B), (0, 0)))
    # Matmul operands share the weights' dtype.  Weights stay in the module's f32 here,
    # so there is NO per-forward cast pass; store the parameter in bf16 on real TPUs to
    # halve the weight HBM stream (binary inputs are exact in bf16, only near-tie
    # argmaxes could differ).
    mac_inputs = mac_inputs.astype(weights.dtype)

    # MAC activity test precomputed here (tiny) so the kernel does no K-wide XLU sum.
    nact = jnp.sum(mac_inputs.astype(jnp.float32), axis=2)            # (num_macs, B_pad)
    active = ((nact >= thr_min[:, None]) & (nact <= thr_max[:, None])).astype(jnp.float32)

    vmem_limit, tile_budget = _vmem_budgets()
    in_bytes = jnp.dtype(weights.dtype).itemsize
    out_bytes = jnp.dtype(out_dtype).itemsize
    G = macs_per_step if macs_per_step is not None else \
        _choose_macs_per_step(num_macs, B_pad, K, F, in_bytes, out_bytes, tile_budget)

    # Pad num_macs with phantom MACs (zero weights, never active) to a multiple of G.
    num_blocks = -(-num_macs // G)
    padded_macs = num_blocks * G
    w = weights
    if padded_macs != num_macs:
        pad = padded_macs - num_macs
        mac_inputs = jnp.pad(mac_inputs, ((0, pad), (0, 0), (0, 0)))
        w = jnp.pad(w, ((0, pad), (0, 0), (0, 0)))
        active = jnp.pad(active, ((0, pad), (0, 0)))

    active = active.reshape(num_blocks, G, B_pad).transpose(0, 2, 1)   # (nb, B_pad, G)

    kernel = functools.partial(sparsey_kernel, G=G,
                               num_cms=num_cms, num_neurons=num_neurons)

    out = pl.pallas_call(
        kernel,
        grid=(num_blocks,),
        in_specs=[
            pl.BlockSpec((G, B_pad, K), lambda m: (m, 0, 0)),    # mac-input tile
            pl.BlockSpec((G, K, F), lambda m: (m, 0, 0)),        # weight tile
            pl.BlockSpec((1, B_pad, G), lambda m: (m, 0, 0)),    # activity-mask tile
        ],
        # Lane-major output: block m writes lanes [m*G*F, (m+1)*G*F) of the same rows,
        # so the wrapper only needs a free reshape (no transpose / extra HBM pass).
        out_specs=pl.BlockSpec((B_pad, G * F), lambda m: (0, m)),
        out_shape=jax.ShapeDtypeStruct((B_pad, padded_macs * F), out_dtype),
        compiler_params=pltpu.CompilerParams(
            dimension_semantics=("parallel",),
            vmem_limit_bytes=vmem_limit),
    )(mac_inputs, w, active)

    out = out.reshape(B_pad, padded_macs, F)                 # free view
    return out[:B, :num_macs]


# ---------------------------------------------------------------------------
# Pure-JAX reference (eval-mode semantics of SparseyLayer.forward)
# ---------------------------------------------------------------------------
def reference_forward(x, weights, conns, thr_min, thr_max, num_cms, num_neurons):
    B, _, prev_F = x.shape
    num_macs, rf = conns.shape
    x_pad = jnp.concatenate([x, jnp.zeros((B, 1, prev_F), x.dtype)], axis=1)
    mac_inputs = x_pad[:, conns].reshape(B, num_macs, rf * prev_F)
    nact = jnp.sum(mac_inputs, axis=2, keepdims=True)
    active = (nact >= thr_min[None, :, None]) & (nact <= thr_max[None, :, None])
    raw = jnp.einsum("bmk,mkf->bmf", mac_inputs, weights)
    raw = jnp.nan_to_num(raw / nact)
    raw = raw.reshape(B, num_macs, num_cms, num_neurons)
    idx = jnp.argmax(raw, axis=3)
    onehot = jax.nn.one_hot(idx, num_neurons, dtype=jnp.float32)
    return onehot.reshape(B, num_macs, num_cms * num_neurons) * active.astype(jnp.float32)


# ---------------------------------------------------------------------------
if __name__ == "__main__":
    # Small synthetic configuration (mirrors SparseyLayer __init__ arguments)
    B = 2
    prev_rows, prev_cols, prev_num_macs = 3, 3, 9
    prev_cms, prev_neurons = 2, 8                     # prev_F = 16
    num_macs, cur_rows, cur_cols = 8, 2, 4
    num_cms, num_neurons = 4, 8                       # F = 32
    rf_size = 0.7
    act_thr_min, act_thr_max = 0.2, 0.8
    grid_layout = "rect"

    mac_pos = compute_mac_positions(num_macs, cur_rows, cur_cols, grid_layout)
    prev_pos = compute_mac_positions(prev_num_macs, prev_rows, prev_cols, grid_layout)
    input_connections_np, rf_sizes_np = find_connected_macs(
        mac_pos, prev_pos, prev_num_macs, rf_size)
    rf = input_connections_np.shape[1]

    # activation thresholds: rf_size_per_mac * (thr * prev_cms) -> per-MAC scalars
    thr_min = jnp.asarray(rf_sizes_np * (act_thr_min * prev_cms), jnp.float32)
    thr_max = jnp.asarray(rf_sizes_np * (act_thr_max * prev_cms), jnp.float32)

    prev_F = prev_cms * prev_neurons
    K = rf * prev_F
    F = num_cms * num_neurons

    key = jax.random.PRNGKey(0)
    kx_act, kx_idx, kw = jax.random.split(key, 3)
    # Sparsey inputs are sparse binary codes: per prev MAC, one-hot per CM when active.
    prev_active = jax.random.bernoulli(
        kx_act, 0.7, (B, prev_num_macs, 1, 1)).astype(jnp.float32)
    prev_idx = jax.random.randint(
        kx_idx, (B, prev_num_macs, prev_cms), 0, prev_neurons)
    x = (jax.nn.one_hot(prev_idx, prev_neurons, dtype=jnp.float32) * prev_active)
    x = x.reshape(B, prev_num_macs, prev_F)
    # Module inits weights to zeros; deterministic random weights keep the forward
    # non-trivial (same shape/dtype as the nn.Parameter: f32).
    weights = jax.random.uniform(kw, (num_macs, K, F), dtype=jnp.float32)

    conns = jnp.asarray(input_connections_np)

    out = sparsey_layer_forward(x, weights, conns, thr_min, thr_max,
                                num_cms, num_neurons)
    out = jax.block_until_ready(out)

    ref = reference_forward(x, weights, conns, thr_min, thr_max,
                            num_cms, num_neurons)

    assert out.shape == (B, num_macs, F)
    np.testing.assert_allclose(np.asarray(out), np.asarray(ref), atol=1e-6)
    print("KERNEL_OK")
</pallas_src>

<mosaic_0001>
module attributes {stable_mosaic.version = 11 : i64} {
  func.func @sparsey_kernel(%arg0: i32, %arg1: memref<4x8x80xf32, #tpu.memory_space<vmem>>, %arg2: memref<4x80x32xf32, #tpu.memory_space<vmem>>, %arg3: memref<1x8x4xf32, #tpu.memory_space<vmem>>, %arg4: memref<8x128xf32, #tpu.memory_space<vmem>>) attributes {dimension_semantics = [#tpu.dimension_semantics<parallel>], iteration_bounds = array<i64: 2>, scalar_prefetch = 0 : i64, scratch_operands = 0 : i64, tpu.core_type = #tpu.core_type<tc>, window_params = [{transform_indices = @transform_0, window_bounds = array<i64: 4, 8, 80>}, {transform_indices = @transform_1, window_bounds = array<i64: 4, 80, 32>}, {transform_indices = @transform_2, window_bounds = array<i64: 1, 8, 4>}, {transform_indices = @transform_3, window_bounds = array<i64: 8, 128>}]} {
    %c0 = arith.constant 0 : index
    %c0_0 = arith.constant 0 : index
    %c0_1 = arith.constant 0 : index
    %0 = vector.load %arg3[%c0, %c0_0, %c0_1] : memref<1x8x4xf32, #tpu.memory_space<vmem>>, vector<1x8x4xf32>
    %1 = vector.shape_cast %0 : vector<1x8x4xf32> to vector<8x4xf32>
    %c0_2 = arith.constant 0 : index
    %c0_3 = arith.constant 0 : index
    %c0_4 = arith.constant 0 : index
    %2 = vector.load %arg1[%c0_2, %c0_3, %c0_4] : memref<4x8x80xf32, #tpu.memory_space<vmem>>, vector<1x8x80xf32>
    %3 = vector.shape_cast %2 : vector<1x8x80xf32> to vector<8x80xf32>
    %c0_5 = arith.constant 0 : index
    %c0_6 = arith.constant 0 : index
    %c0_7 = arith.constant 0 : index
    %4 = vector.load %arg2[%c0_5, %c0_6, %c0_7] : memref<4x80x32xf32, #tpu.memory_space<vmem>>, vector<1x80x32xf32>
    %5 = vector.shape_cast %4 : vector<1x80x32xf32> to vector<80x32xf32>
    %cst = arith.constant dense<0.000000e+00> : vector<8x32xf32>
    %6 = tpu.matmul %3, %5, %cst {dimension_numbers = #tpu.dot_dimension_numbers<[1], [0], [0], [1], [0, 0, 1, 1], [], []>} : vector<8x80xf32>, vector<80x32xf32>, vector<8x32xf32> -> vector<8x32xf32>
    %c1 = arith.constant 1 : index
    %c0_8 = arith.constant 0 : index
    %c0_9 = arith.constant 0 : index
    %7 = vector.load %arg1[%c1, %c0_8, %c0_9] : memref<4x8x80xf32, #tpu.memory_space<vmem>>, vector<1x8x80xf32>
    %8 = vector.shape_cast %7 : vector<1x8x80xf32> to vector<8x80xf32>
    %c1_10 = arith.constant 1 : index
    %c0_11 = arith.constant 0 : index
    %c0_12 = arith.constant 0 : index
    %9 = vector.load %arg2[%c1_10, %c0_11, %c0_12] : memref<4x80x32xf32, #tpu.memory_space<vmem>>, vector<1x80x32xf32>
    %10 = vector.shape_cast %9 : vector<1x80x32xf32> to vector<80x32xf32>
    %cst_13 = arith.constant dense<0.000000e+00> : vector<8x32xf32>
    %11 = tpu.matmul %8, %10, %cst_13 {dimension_numbers = #tpu.dot_dimension_numbers<[1], [0], [0], [1], [0, 0, 1, 1], [], []>} : vector<8x80xf32>, vector<80x32xf32>, vector<8x32xf32> -> vector<8x32xf32>
    %c2 = arith.constant 2 : index
    %c0_14 = arith.constant 0 : index
    %c0_15 = arith.constant 0 : index
    %12 = vector.load %arg1[%c2, %c0_14, %c0_15] : memref<4x8x80xf32, #tpu.memory_space<vmem>>, vector<1x8x80xf32>
    %13 = vector.shape_cast %12 : vector<1x8x80xf32> to vector<8x80xf32>
    %c2_16 = arith.constant 2 : index
    %c0_17 = arith.constant 0 : index
    %c0_18 = arith.constant 0 : index
    %14 = vector.load %arg2[%c2_16, %c0_17, %c0_18] : memref<4x80x32xf32, #tpu.memory_space<vmem>>, vector<1x80x32xf32>
    %15 = vector.shape_cast %14 : vector<1x80x32xf32> to vector<80x32xf32>
    %cst_19 = arith.constant dense<0.000000e+00> : vector<8x32xf32>
    %16 = tpu.matmul %13, %15, %cst_19 {dimension_numbers = #tpu.dot_dimension_numbers<[1], [0], [0], [1], [0, 0, 1, 1], [], []>} : vector<8x80xf32>, vector<80x32xf32>, vector<8x32xf32> -> vector<8x32xf32>
    %c3 = arith.constant 3 : index
    %c0_20 = arith.constant 0 : index
    %c0_21 = arith.constant 0 : index
    %17 = vector.load %arg1[%c3, %c0_20, %c0_21] : memref<4x8x80xf32, #tpu.memory_space<vmem>>, vector<1x8x80xf32>
    %18 = vector.shape_cast %17 : vector<1x8x80xf32> to vector<8x80xf32>
    %c3_22 = arith.constant 3 : index
    %c0_23 = arith.constant 0 : index
    %c0_24 = arith.constant 0 : index
    %19 = vector.load %arg2[%c3_22, %c0_23, %c0_24] : memref<4x80x32xf32, #tpu.memory_space<vmem>>, vector<1x80x32xf32>
    %20 = vector.shape_cast %19 : vector<1x80x32xf32> to vector<80x32xf32>
    %cst_25 = arith.constant dense<0.000000e+00> : vector<8x32xf32>
    %21 = tpu.matmul %18, %20, %cst_25 {dimension_numbers = #tpu.dot_dimension_numbers<[1], [0], [0], [1], [0, 0, 1, 1], [], []>} : vector<8x80xf32>, vector<80x32xf32>, vector<8x32xf32> -> vector<8x32xf32>
    %22 = tpu.concatenate %6, %11, %16, %21 in 1 : vector<8x32xf32>, vector<8x32xf32>, vector<8x32xf32>, vector<8x32xf32> -> vector<8x128xf32>
    %23 = tpu.iota {dimensions = array<i32: 1>} : vector<8x128xi32>
    %c8_i32 = arith.constant 8 : i32
    %c0_i32 = arith.constant 0 : i32
    %24 = arith.cmpi eq, %c8_i32, %c0_i32 : i32
    %c1_i32 = arith.constant 1 : i32
    %25 = arith.select %24, %c1_i32, %c8_i32 : i32
    %26 = vector.broadcast %25 : i32 to vector<8x128xi32>
    %27 = arith.remsi %23, %26 : vector<8x128xi32>
    %c0_i32_26 = arith.constant 0 : i32
    %28 = vector.broadcast %c0_i32_26 : i32 to vector<8x128xi32>
    %29 = arith.cmpi ne, %27, %28 : vector<8x128xi32>
    %c0_i32_27 = arith.constant 0 : i32
    %30 = vector.broadcast %c0_i32_27 : i32 to vector<8x128xi32>
    %31 = arith.cmpi slt, %27, %30 : vector<8x128xi32>
    %c0_i32_28 = arith.constant 0 : i32
    %32 = arith.cmpi slt, %25, %c0_i32_28 : i32
    %33 = vector.broadcast %32 : i1 to vector<8x128xi1>
    %34 = vector.broadcast %33 : vector<8x128xi1> to vector<8x128xi1>
    %35 = arith.xori %31, %34 : vector<8x128xi1>
    %36 = arith.andi %35, %29 : vector<8x128xi1>
    %37 = vector.broadcast %25 : i32 to vector<8x128xi32>
    %38 = arith.addi %27, %37 : vector<8x128xi32>
    %39 = arith.select %36, %38, %27 : vector<8x128xi1>, vector<8x128xi32>
    %40 = vector.extract_strided_slice %22 {offsets = [0, 127], sizes = [8, 1], strides = [1, 1]} : vector<8x128xf32> to vector<8x1xf32>
    %41 = vector.extract_strided_slice %22 {offsets = [0, 0], sizes = [8, 127], strides = [1, 1]} : vector<8x128xf32> to vector<8x127xf32>
    %42 = tpu.concatenate %40, %41 in 1 : vector<8x1xf32>, vector<8x127xf32> -> vector<8x128xf32>
    %c1_i32_29 = arith.constant 1 : i32
    %43 = vector.broadcast %c1_i32_29 : i32 to vector<8x128xi32>
    %44 = arith.cmpi sge, %39, %43 : vector<8x128xi32>
    %cst_30 = arith.constant 0xFF800000 : f32
    %45 = vector.broadcast %cst_30 : f32 to vector<8x128xf32>
    %46 = arith.select %44, %42, %45 : vector<8x128xi1>, vector<8x128xf32>
    %47 = arith.maximumf %22, %46 : vector<8x128xf32>
    %48 = vector.extract_strided_slice %47 {offsets = [0, 126], sizes = [8, 2], strides = [1, 1]} : vector<8x128xf32> to vector<8x2xf32>
    %49 = vector.extract_strided_slice %47 {offsets = [0, 0], sizes = [8, 126], strides = [1, 1]} : vector<8x128xf32> to vector<8x126xf32>
    %50 = tpu.concatenate %48, %49 in 1 : vector<8x2xf32>, vector<8x126xf32> -> vector<8x128xf32>
    %c2_i32 = arith.constant 2 : i32
    %51 = vector.broadcast %c2_i32 : i32 to vector<8x128xi32>
    %52 = arith.cmpi sge, %39, %51 : vector<8x128xi32>
    %cst_31 = arith.constant 0xFF800000 : f32
    %53 = vector.broadcast %cst_31 : f32 to vector<8x128xf32>
    %54 = arith.select %52, %50, %53 : vector<8x128xi1>, vector<8x128xf32>
    %55 = arith.maximumf %47, %54 : vector<8x128xf32>
    %56 = vector.extract_strided_slice %55 {offsets = [0, 124], sizes = [8, 4], strides = [1, 1]} : vector<8x128xf32> to vector<8x4xf32>
    %57 = vector.extract_strided_slice %55 {offsets = [0, 0], sizes = [8, 124], strides = [1, 1]} : vector<8x128xf32> to vector<8x124xf32>
    %58 = tpu.concatenate %56, %57 in 1 : vector<8x4xf32>, vector<8x124xf32> -> vector<8x128xf32>
    %c4_i32 = arith.constant 4 : i32
    %59 = vector.broadcast %c4_i32 : i32 to vector<8x128xi32>
    %60 = arith.cmpi sge, %39, %59 : vector<8x128xi32>
    %cst_32 = arith.constant 0xFF800000 : f32
    %61 = vector.broadcast %cst_32 : f32 to vector<8x128xf32>
    %62 = arith.select %60, %58, %61 : vector<8x128xi1>, vector<8x128xf32>
    %63 = arith.maximumf %55, %62 : vector<8x128xf32>
    %64 = vector.extract_strided_slice %63 {offsets = [0, 1], sizes = [8, 127], strides = [1, 1]} : vector<8x128xf32> to vector<8x127xf32>
    %65 = vector.extract_strided_slice %63 {offsets = [0, 0], sizes = [8, 1], strides = [1, 1]} : vector<8x128xf32> to vector<8x1xf32>
    %66 = tpu.concatenate %64, %65 in 1 : vector<8x127xf32>, vector<8x1xf32> -> vector<8x128xf32>
    %c1_i32_33 = arith.constant 1 : i32
    %67 = vector.broadcast %c1_i32_33 : i32 to vector<8x128xi32>
    %68 = arith.addi %39, %67 : vector<8x128xi32>
    %c8_i32_34 = arith.constant 8 : i32
    %69 = vector.broadcast %c8_i32_34 : i32 to vector<8x128xi32>
    %70 = arith.cmpi slt, %68, %69 : vector<8x128xi32>
    %cst_35 = arith.constant 0xFF800000 : f32
    %71 = vector.broadcast %cst_35 : f32 to vector<8x128xf32>
    %72 = arith.select %70, %66, %71 : vector<8x128xi1>, vector<8x128xf32>
    %73 = arith.maximumf %63, %72 : vector<8x128xf32>
    %74 = vector.extract_strided_slice %73 {offsets = [0, 2], sizes = [8, 126], strides = [1, 1]} : vector<8x128xf32> to vector<8x126xf32>
    %75 = vector.extract_strided_slice %73 {offsets = [0, 0], sizes = [8, 2], strides = [1, 1]} : vector<8x128xf32> to vector<8x2xf32>
    %76 = tpu.concatenate %74, %75 in 1 : vector<8x126xf32>, vector<8x2xf32> -> vector<8x128xf32>
    %c2_i32_36 = arith.constant 2 : i32
    %77 = vector.broadcast %c2_i32_36 : i32 to vector<8x128xi32>
    %78 = arith.addi %39, %77 : vector<8x128xi32>
    %c8_i32_37 = arith.constant 8 : i32
    %79 = vector.broadcast %c8_i32_37 : i32 to vector<8x128xi32>
    %80 = arith.cmpi slt, %78, %79 : vector<8x128xi32>
    %cst_38 = arith.constant 0xFF800000 : f32
    %81 = vector.broadcast %cst_38 : f32 to vector<8x128xf32>
    %82 = arith.select %80, %76, %81 : vector<8x128xi1>, vector<8x128xf32>
    %83 = arith.maximumf %73, %82 : vector<8x128xf32>
    %84 = vector.extract_strided_slice %83 {offsets = [0, 4], sizes = [8, 124], strides = [1, 1]} : vector<8x128xf32> to vector<8x124xf32>
    %85 = vector.extract_strided_slice %83 {offsets = [0, 0], sizes = [8, 4], strides = [1, 1]} : vector<8x128xf32> to vector<8x4xf32>
    %86 = tpu.concatenate %84, %85 in 1 : vector<8x124xf32>, vector<8x4xf32> -> vector<8x128xf32>
    %c4_i32_39 = arith.constant 4 : i32
    %87 = vector.broadcast %c4_i32_39 : i32 to vector<8x128xi32>
    %88 = arith.addi %39, %87 : vector<8x128xi32>
    %c8_i32_40 = arith.constant 8 : i32
    %89 = vector.broadcast %c8_i32_40 : i32 to vector<8x128xi32>
    %90 = arith.cmpi slt, %88, %89 : vector<8x128xi32>
    %cst_41 = arith.constant 0xFF800000 : f32
    %91 = vector.broadcast %cst_41 : f32 to vector<8x128xf32>
    %92 = arith.select %90, %86, %91 : vector<8x128xi1>, vector<8x128xf32>
    %93 = arith.maximumf %83, %92 : vector<8x128xf32>
    %94 = arith.cmpf oeq, %22, %93 : vector<8x128xf32>
    %c8_i32_42 = arith.constant 8 : i32
    %95 = vector.broadcast %c8_i32_42 : i32 to vector<8x128xi32>
    %96 = arith.select %94, %39, %95 : vector<8x128xi1>, vector<8x128xi32>
    %97 = vector.extract_strided_slice %96 {offsets = [0, 127], sizes = [8, 1], strides = [1, 1]} : vector<8x128xi32> to vector<8x1xi32>
    %98 = vector.extract_strided_slice %96 {offsets = [0, 0], sizes = [8, 127], strides = [1, 1]} : vector<8x128xi32> to vector<8x127xi32>
    %99 = tpu.concatenate %97, %98 in 1 : vector<8x1xi32>, vector<8x127xi32> -> vector<8x128xi32>
    %c1_i32_43 = arith.constant 1 : i32
    %100 = vector.broadcast %c1_i32_43 : i32 to vector<8x128xi32>
    %101 = arith.cmpi sge, %39, %100 : vector<8x128xi32>
    %c8_i32_44 = arith.constant 8 : i32
    %102 = vector.broadcast %c8_i32_44 : i32 to vector<8x128xi32>
    %103 = arith.select %101, %99, %102 : vector<8x128xi1>, vector<8x128xi32>
    %104 = arith.minsi %96, %103 : vector<8x128xi32>
    %105 = vector.extract_strided_slice %104 {offsets = [0, 126], sizes = [8, 2], strides = [1, 1]} : vector<8x128xi32> to vector<8x2xi32>
    %106 = vector.extract_strided_slice %104 {offsets = [0, 0], sizes = [8, 126], strides = [1, 1]} : vector<8x128xi32> to vector<8x126xi32>
    %107 = tpu.concatenate %105, %106 in 1 : vector<8x2xi32>, vector<8x126xi32> -> vector<8x128xi32>
    %c2_i32_45 = arith.constant 2 : i32
    %108 = vector.broadcast %c2_i32_45 : i32 to vector<8x128xi32>
    %109 = arith.cmpi sge, %39, %108 : vector<8x128xi32>
    %c8_i32_46 = arith.constant 8 : i32
    %110 = vector.broadcast %c8_i32_46 : i32 to vector<8x128xi32>
    %111 = arith.select %109, %107, %110 : vector<8x128xi1>, vector<8x128xi32>
    %112 = arith.minsi %104, %111 : vector<8x128xi32>
    %113 = vector.extract_strided_slice %112 {offsets = [0, 124], sizes = [8, 4], strides = [1, 1]} : vector<8x128xi32> to vector<8x4xi32>
    %114 = vector.extract_strided_slice %112 {offsets = [0, 0], sizes = [8, 124], strides = [1, 1]} : vector<8x128xi32> to vector<8x124xi32>
    %115 = tpu.concatenate %113, %114 in 1 : vector<8x4xi32>, vector<8x124xi32> -> vector<8x128xi32>
    %c4_i32_47 = arith.constant 4 : i32
    %116 = vector.broadcast %c4_i32_47 : i32 to vector<8x128xi32>
    %117 = arith.cmpi sge, %39, %116 : vector<8x128xi32>
    %c8_i32_48 = arith.constant 8 : i32
    %118 = vector.broadcast %c8_i32_48 : i32 to vector<8x128xi32>
    %119 = arith.select %117, %115, %118 : vector<8x128xi1>, vector<8x128xi32>
    %120 = arith.minsi %112, %119 : vector<8x128xi32>
    %121 = vector.extract_strided_slice %120 {offsets = [0, 1], sizes = [8, 127], strides = [1, 1]} : vector<8x128xi32> to vector<8x127xi32>
    %122 = vector.extract_strided_slice %120 {offsets = [0, 0], sizes = [8, 1], strides = [1, 1]} : vector<8x128xi32> to vector<8x1xi32>
    %123 = tpu.concatenate %121, %122 in 1 : vector<8x127xi32>, vector<8x1xi32> -> vector<8x128xi32>
    %c1_i32_49 = arith.constant 1 : i32
    %124 = vector.broadcast %c1_i32_49 : i32 to vector<8x128xi32>
    %125 = arith.addi %39, %124 : vector<8x128xi32>
    %c8_i32_50 = arith.constant 8 : i32
    %126 = vector.broadcast %c8_i32_50 : i32 to vector<8x128xi32>
    %127 = arith.cmpi slt, %125, %126 : vector<8x128xi32>
    %c8_i32_51 = arith.constant 8 : i32
    %128 = vector.broadcast %c8_i32_51 : i32 to vector<8x128xi32>
    %129 = arith.select %127, %123, %128 : vector<8x128xi1>, vector<8x128xi32>
    %130 = arith.minsi %120, %129 : vector<8x128xi32>
    %131 = vector.extract_strided_slice %130 {offsets = [0, 2], sizes = [8, 126], strides = [1, 1]} : vector<8x128xi32> to vector<8x126xi32>
    %132 = vector.extract_strided_slice %130 {offsets = [0, 0], sizes = [8, 2], strides = [1, 1]} : vector<8x128xi32> to vector<8x2xi32>
    %133 = tpu.concatenate %131, %132 in 1 : vector<8x126xi32>, vector<8x2xi32> -> vector<8x128xi32>
    %c2_i32_52 = arith.constant 2 : i32
    %134 = vector.broadcast %c2_i32_52 : i32 to vector<8x128xi32>
    %135 = arith.addi %39, %134 : vector<8x128xi32>
    %c8_i32_53 = arith.constant 8 : i32
    %136 = vector.broadcast %c8_i32_53 : i32 to vector<8x128xi32>
    %137 = arith.cmpi slt, %135, %136 : vector<8x128xi32>
    %c8_i32_54 = arith.constant 8 : i32
    %138 = vector.broadcast %c8_i32_54 : i32 to vector<8x128xi32>
    %139 = arith.select %137, %133, %138 : vector<8x128xi1>, vector<8x128xi32>
    %140 = arith.minsi %130, %139 : vector<8x128xi32>
    %141 = vector.extract_strided_slice %140 {offsets = [0, 4], sizes = [8, 124], strides = [1, 1]} : vector<8x128xi32> to vector<8x124xi32>
    %142 = vector.extract_strided_slice %140 {offsets = [0, 0], sizes = [8, 4], strides = [1, 1]} : vector<8x128xi32> to vector<8x4xi32>
    %143 = tpu.concatenate %141, %142 in 1 : vector<8x124xi32>, vector<8x4xi32> -> vector<8x128xi32>
    %c4_i32_55 = arith.constant 4 : i32
    %144 = vector.broadcast %c4_i32_55 : i32 to vector<8x128xi32>
    %145 = arith.addi %39, %144 : vector<8x128xi32>
    %c8_i32_56 = arith.constant 8 : i32
    %146 = vector.broadcast %c8_i32_56 : i32 to vector<8x128xi32>
    %147 = arith.cmpi slt, %145, %146 : vector<8x128xi32>
    %c8_i32_57 = arith.constant 8 : i32
    %148 = vector.broadcast %c8_i32_57 : i32 to vector<8x128xi32>
    %149 = arith.select %147, %143, %148 : vector<8x128xi1>, vector<8x128xi32>
    %150 = arith.minsi %140, %149 : vector<8x128xi32>
    %151 = arith.cmpi eq, %39, %150 : vector<8x128xi32>
    %152 = arith.extui %151 : vector<8x128xi1> to vector<8x128xi32>
    %153 = arith.sitofp %152 : vector<8x128xi32> to vector<8x128xf32>
    %154 = vector.extract_strided_slice %1 {offsets = [0, 0], sizes = [8, 1], strides = [1, 1]} : vector<8x4xf32> to vector<8x1xf32>
    %155 = vector.shape_cast %154 : vector<8x1xf32> to vector<8x1xf32>
    %156 = vector.broadcast %155 : vector<8x1xf32> to vector<8x32xf32>
    %157 = vector.extract_strided_slice %1 {offsets = [0, 1], sizes = [8, 1], strides = [1, 1]} : vector<8x4xf32> to vector<8x1xf32>
    %158 = vector.shape_cast %157 : vector<8x1xf32> to vector<8x1xf32>
    %159 = vector.broadcast %158 : vector<8x1xf32> to vector<8x32xf32>
    %160 = vector.extract_strided_slice %1 {offsets = [0, 2], sizes = [8, 1], strides = [1, 1]} : vector<8x4xf32> to vector<8x1xf32>
    %161 = vector.shape_cast %160 : vector<8x1xf32> to vector<8x1xf32>
    %162 = vector.broadcast %161 : vector<8x1xf32> to vector<8x32xf32>
    %163 = vector.extract_strided_slice %1 {offsets = [0, 3], sizes = [8, 1], strides = [1, 1]} : vector<8x4xf32> to vector<8x1xf32>
    %164 = vector.shape_cast %163 : vector<8x1xf32> to vector<8x1xf32>
    %165 = vector.broadcast %164 : vector<8x1xf32> to vector<8x32xf32>
    %166 = tpu.concatenate %156, %159, %162, %165 in 1 : vector<8x32xf32>, vector<8x32xf32>, vector<8x32xf32>, vector<8x32xf32> -> vector<8x128xf32>
    %167 = arith.mulf %153, %166 : vector<8x128xf32>
    %c0_58 = arith.constant 0 : index
    %c0_59 = arith.constant 0 : index
    %168 = vector.load %arg4[%c0_58, %c0_59] : memref<8x128xf32, #tpu.memory_space<vmem>>, vector<8x128xf32>
    tpu.vector_store %arg4[%c0_58, %c0_59], %167 {strides = array<i32>} : memref<8x128xf32, #tpu.memory_space<vmem>>, vector<8x128xf32>,
    return
  }
  func.func @transform_0(%arg0: i32) -> (i32, i32, i32) {
    %c0_i32 = arith.constant 0 : i32
    %c0_i32_0 = arith.constant 0 : i32
    %c0_i32_1 = arith.constant 0 : i32
    return %arg0, %c0_i32, %c0_i32_0 : i32, i32, i32
  }
  func.func @transform_1(%arg0: i32) -> (i32, i32, i32) {
    %c0_i32 = arith.constant 0 : i32
    %c0_i32_0 = arith.constant 0 : i32
    %c0_i32_1 = arith.constant 0 : i32
    return %arg0, %c0_i32, %c0_i32_0 : i32, i32, i32
  }
  func.func @transform_2(%arg0: i32) -> (i32, i32, i32) {
    %c0_i32 = arith.constant 0 : i32
    %c0_i32_0 = arith.constant 0 : i32
    %c0_i32_1 = arith.constant 0 : i32
    return %arg0, %c0_i32, %c0_i32_0 : i32, i32, i32
  }
  func.func @transform_3(%arg0: i32) -> (i32, i32) {
    %c0_i32 = arith.constant 0 : i32
    %c0_i32_0 = arith.constant 0 : i32
    return %c0_i32, %arg0 : i32, i32
  }
}

</mosaic_0001>

<bundles_post_ra>
// kernel: tpu_custom_call.1
= control target key start
LH: loop header
LB: loop body
LE: loop exit
PB: predicated region body
PF: predicated region fallthrough
CT: control target
= control target key end

     0   :  { %8 = vsyncpa [#allocation3], 0  ;;  %s993_s0 = inlined_call_operand.vmem [shape: f32[8,8,80], index: 0, kind: input, shape index: {}]   ;;  %s994_s1 = inlined_call_operand.vmem [shape: f32[8,80,32], index: 1, kind: input, shape index: {}]   ;;  %s995_s2 = inlined_call_operand.vmem [shape: f32[2,8,4], index: 2, kind: input, shape index: {}]   ;;  %s996_s3 = inlined_call_operand.hbm [shape: f32[8,256], index: 3, kind: output, shape index: {}]  }
   0x1   :  { %10 = vsyncpa [#allocation3 + $0x1], 0  ;;  %s799_s12 = smov 0   ;;  %s801_s13 = smov 0  }
   0x2   :  { %s803_s14 = smov 0   ;;  %s805_s15 = smov 0  }
   0x3 LB: > { %s820_s16 = sadd.s32 4294967295, %s763_s15   ;;  %s590_s17 = sadd.s32 4294967294, %s763_s15   ;;  %s763_s15 = sphi %s805_s15, %s1002_s15   ;;  %s759_s14 = sphi %s803_s14, %s1001_s14   ;;  %s755_s13 = sphi %s801_s13, %s1000_s13   ;;  %s751_s12 = sphi %s799_s12, %s999_s12  }
   0x4   : > { %s824_s18 = sadd.s32 1, %s763_s15   ;;  %s101_s19 = sadd.s32 1, %s759_s14 }
   0x5   : > { %s98_s20 = ssub.s32 %s763_s15, %s824_s18  ;;  %p111_p0 = scmp.ne.s32.totalorder %s759_s14, %s755_s13 }
   0x6   : > { %p99_p1 = scmp.eq.s32.totalorder %s98_s20, 0  ;;  %p112_p2 = scmp.eq.s32.totalorder %s820_s16, 1 }
   0x7   : > { %p117_p3 = scmp.ne.s32.totalorder %s755_s13, %s751_s12  ;;  %p118_p4 = scmp.eq.s32.totalorder %s590_s17, 1 }
   0x8   : > { %s835_s21 = scalar_select %p99_p1, %s759_s14, %s101_s19  }
   0x9   : > { %p837_p5 = por %p112_p2, %p111_p0  ;;  %p841_p6 = por %p118_p4, %p117_p3 }
   0xa   : > { %p593_p7 = scmp.ge.s32.totalorder %s763_s15, 1  ;;  %p162_p8 = scmp.lt.s32.totalorder %s763_s15, 3 }
   0xc   : > { %p163_p9 = pnand %p593_p7, %p162_p8 }
   0xd   : > { %s595_s24 = sshll.u32 (!%p163_p9), %s820_s16, 2  ;;  %s765_s6 = smov (!%p163_p9), 32  }
   0xe   : > { %166 = sbr.rel (%p163_p9) target bundleno = 1604 (0x644), region = 32  ;;  %p197_p10 = scmp.lt.s32.totalorder (!%p163_p9), %s595_s24, 7 }
   0xf   : > { %s766_s7 = smov (!%p163_p9), 64   ;;  %s767_s8 = smov (!%p163_p9), 96  }
  0x10   : > { %s768_s9 = smov (!%p163_p9), 1   ;;  %s769_s10 = smov (!%p163_p9), 2  }
  0x11   : > { %s770_s11 = smov (!%p163_p9), 4   ;;  %s771_s17 = smov (!%p163_p9), 127  }
  0x12   : > { %s772_s19 = smov (!%p163_p9), 126   ;;  %s773_s20 = smov (!%p163_p9), 124  }
  0x13   : > { %s1004_s24 = smov (!%p197_p10, %s595_s24), 7  ;;  %vm225_vm0 = vcmask 654336   ;;  %vm369_vm1 = vcmask 261120   ;;  %vm371_vm2 = vcmask 523264   ;;  %vm373_vm3 = vcmask 785408   ;;  %p209_p11 = scmp.lt.s32.totalorder %s820_s16, 1 }
  0x14   : > { %s642_s25 = smul.u32 80, %s1004_s24  ;;  %s596_s29 = sshll.u32 %s1004_s24, 3  ;;  %v375_v54 = vlaneseq }
  0x15   : > { %s889_s5 = scalar_lea.vmem %s993_s0, %s596_s29  ;;  %s193_s29 = sand.u32 1, %s755_s13  }
  0x16   : > { %s854_s28 = scalar_lea.vmem %s994_s1, %s642_s25  ;;  %v601_v33 = vld [vmem:[%s889_s5 + $0x8] sm:$0xff]  ;;  %v613_v34 = vld [vmem:[%s889_s5 + $0x10] sm:$0xff]  ;;  %v625_v37 = vld [vmem:[%s889_s5 + $0x18] sm:$0xff]  ;;  %v376_v55 = vand.u32 127, %v375_v54  ;;  %s594_s30 = sshll.u32 %s193_s29, 3 }
  0x17   : > { %v611_v0 = vld [vmem:[%s854_s28 + $0x98] sm:$0xff]  ;;  %v610_v1 = vld [vmem:[%s854_s28 + $0x90] sm:$0xff]  ;;  %v623_v2 = vld [vmem:[%s854_s28 + $0xe8] sm:$0xff]  ;;  %s210_s24 = scalar_select %p209_p11, %s820_s16, 1 }
  0x18   : > { %271 = vmatpush.msra.mxu1 %v611_v0  ;;  %307 = vmatpush.msra.mxu2 %v623_v2  ;;  %v635_v3 = vld [vmem:[%s854_s28 + $0x138] sm:$0xff]  ;;  %v622_v4 = vld [vmem:[%s854_s28 + $0xe0] sm:$0xff]  ;;  %v609_v5 = vld [vmem:[%s854_s28 + $0x88] sm:$0xff]  ;;  %v914_v56 = vand.u32 7, %v376_v55  ;;  %s639_s4 = sshll.u32 %s820_s16, 3  ;;  %s492_s16 = scalar_lea.sflag [#allocation3], %s193_s29 }
  0x19   : > { %343 = vmatpush.msra.mxu3 %v635_v3  ;;  %v634_v6 = vld [vmem:[%s854_s28 + $0x130] sm:$0xff]  ;;  %v621_v7 = vld [vmem:[%s854_s28 + $0xd8] sm:$0xff]  ;;  %v633_v8 = vld [vmem:[%s854_s28 + $0x128] sm:$0xff]  ;;  %s599_s25 = sshll.u32 %s210_s24, 3  ;;  %s721_s24 = scalar_lea.hbm %s996_s3, 16 }
  0x1a   : > { %272 = vmatpush.msra.mxu1 %v610_v1  ;;  %308 = vmatpush.msra.mxu2 %v622_v4  ;;  %v608_v9 = vld [vmem:[%s854_s28 + $0x80] sm:$0xff]  ;;  %v620_v10 = vld [vmem:[%s854_s28 + $0xd0] sm:$0xff]  ;;  %v607_v12 = vld [vmem:[%s854_s28 + $0x78] sm:$0xff]  ;;  %vm393_vm4 = vcmp.ge.s32.totalorder %v914_v56, 1  ;;  %vm400_vm5 = vcmp.ge.s32.totalorder %v914_v56, 2  ;;  %vm407_vm6 = vcmp.ge.s32.totalorder %v914_v56, 4 }
  0x1b   : > { %344 = vmatpush.msra.mxu3 %v634_v6  ;;  %v632_v11 = vld [vmem:[%s854_s28 + $0x120] sm:$0xff]  ;;  %v619_v13 = vld [vmem:[%s854_s28 + $0xc8] sm:$0xff]  ;;  %v631_v14 = vld [vmem:[%s854_s28 + $0x118] sm:$0xff]  ;;  %v414_v2 = vadd.s32 1, %v914_v56  ;;  %v422_v6 = vadd.s32 2, %v914_v56 }
  0x1c   : > { %273 = vmatpush.msra.mxu1 %v609_v5  ;;  %309 = vmatpush.msra.mxu2 %v621_v7  ;;  %v606_v15 = vld [vmem:[%s854_s28 + $0x70] sm:$0xff]  ;;  %v618_v16 = vld [vmem:[%s854_s28 + $0xc0] sm:$0xff]  ;;  %v605_v18 = vld [vmem:[%s854_s28 + $0x68] sm:$0xff] }
  0x1d   : > { %345 = vmatpush.msra.mxu3 %v633_v8  ;;  %v630_v17 = vld [vmem:[%s854_s28 + $0x110] sm:$0xff]  ;;  %v617_v19 = vld [vmem:[%s854_s28 + $0xb8] sm:$0xff]  ;;  %v224_v20 = vld [vmem:[%s854_s28 + $0x48] sm:$0xff]  ;;  %vm415_vm7 = vcmp.lt.s32.totalorder %v414_v2, 8  ;;  %vm423_vm8 = vcmp.lt.s32.totalorder %v422_v6, 8 }
  0x1e   : > { %274 = vmatpush.msra.mxu1 %v608_v9  ;;  %310 = vmatpush.msra.mxu2 %v620_v10  ;;  %v629_v21 = vld [vmem:[%s854_s28 + $0x108] sm:$0xff]  ;;  %v223_v22 = vld [vmem:[%s854_s28 + $0x40] sm:$0xff]  ;;  %v616_v24 = vld [vmem:[%s854_s28 + $0xb0] sm:$0xff]  ;;  %v430_v10 = vadd.s32 4, %v914_v56 }
  0x1f   : > { %346 = vmatpush.msra.mxu3 %v632_v11  ;;  %v604_v23 = vld [vmem:[%s854_s28 + $0x60] sm:$0xff]  ;;  %235 = vmatpush.msra.mxu0 %v224_v20  ;;  %v222_v26 = vld [vmem:[%s854_s28 + $0x38] sm:$0xff]  ;;  %v615_v28 = vld [vmem:[%s854_s28 + $0xa8] sm:$0xff] }
  0x20   : > { %275 = vmatpush.msra.mxu1 %v607_v12  ;;  %311 = vmatpush.msra.mxu2 %v619_v13  ;;  %v628_v25 = vld [vmem:[%s854_s28 + $0x100] sm:$0xff]  ;;  %v603_v27 = vld [vmem:[%s854_s28 + $0x58] sm:$0xff]  ;;  %v221_v30 = vld [vmem:[%s854_s28 + $0x30] sm:$0xff]  ;;  %vm431_vm9 = vcmp.lt.s32.totalorder %v430_v10, 8 }
  0x21   : > { %347 = vmatpush.msra.mxu3 %v631_v14  ;;  %236 = vmatpush.msra.mxu0 %v223_v22  ;;  %v627_v29 = vld [vmem:[%s854_s28 + $0xf8] sm:$0xff]  ;;  %v602_v31 = vld [vmem:[%s854_s28 + $0x50] sm:$0xff]  ;;  %v614_v32 = vld [vmem:[%s854_s28 + $0xa0] sm:$0xff] }
  0x22   : > { %276 = vmatpush.msra.mxu1 %v606_v15  ;;  %312 = vmatpush.msra.mxu2 %v618_v16  ;;  %v626_v35 = vld [vmem:[%s854_s28 + $0xf0] sm:$0xff]  ;;  %v220_v36 = vld [vmem:[%s854_s28 + $0x28] sm:$0xff]  ;;  %v219_v38 = vld [vmem:[%s854_s28 + $0x20] sm:$0xff] }
  0x23   : > { %348 = vmatpush.msra.mxu3 %v630_v17  ;;  %237 = vmatpush.msra.mxu0 %v222_v26  ;;  %v218_v39 = vld [vmem:[%s854_s28 + $0x18] sm:$0xff]  ;;  %v217_v40 = vld [vmem:[%s854_s28 + $0x10] sm:$0xff]  ;;  %v216_v41 = vld [vmem:[%s854_s28 + $0x8] sm:$0xff]  ;;  %v775_v26 = vmov 0  }
  0x24   : > { %277 = vmatpush.msra.mxu1 %v605_v18  ;;  %313 = vmatpush.msra.mxu2 %v617_v19  ;;  %v215_v42 = vld [vmem:[%s854_s28] sm:$0xff]  ;;  %s212_s28 = scalar_lea.vmem %s995_s2, %s599_s25 }
  0x25   : > { %349 = vmatpush.msra.mxu3 %v629_v21  ;;  %238 = vmatpush.msra.mxu0 %v221_v30  ;;  %v214_v43 = vld [vmem:[%s889_s5] sm:$0xff] }
  0x26   : > { %278 = vmatpush.msra.mxu1 %v604_v23  ;;  %314 = vmatpush.msra.mxu2 %v616_v24  ;;  %v213_v24 = vld [vmem:[%s212_s28] sm:$0xff] }
  0x27   : > { %350 = vmatpush.msra.mxu3 %v628_v25  ;;  %239 = vmatpush.msra.mxu0 %v220_v36  ;;  %v774_v25 = vmov 1  }
  0x28   : > { %279 = vmatpush.msra.mxu1 %v603_v27  ;;  %315 = vmatpush.msra.mxu2 %v615_v28  ;;  %v776_v27 = vmov 3  }
  0x29   : > { %351 = vmatpush.msra.mxu3 %v627_v29  ;;  %240 = vmatpush.msra.mxu0 %v219_v38 }
  0x2a   : > { %280 = vmatpush.msra.mxu1 %v602_v31  ;;  %316 = vmatpush.msra.mxu2 %v614_v32  ;;  %v777_v31 = vmov 2  }
  0x2b   : > { %612 = vmatmul.msk.f32.vlgmr.msra.gmra.mxu1 %vm225_vm0, %v601_v33  ;;  %624 = vmatmul.msk.f32.vlgmr.msra.gmra.mxu2 %vm225_vm0, %v613_v34 }
  0x2c   : > { %352 = vmatpush.msra.mxu3 %v626_v35  ;;  %241 = vmatpush.msra.mxu0 %v218_v39 }
  0x2d   : > { %636 = vmatmul.msk.f32.vlgmr.msra.gmra.mxu3 %vm225_vm0, %v625_v37  ;;  %697 = vset.pattern.permute.xlu1 %v774_v25 }
  0x2e   : > { %242 = vmatpush.msra.mxu0 %v217_v40  ;;  %696 = vset.pattern.permute.xlu0 %v775_v26 }
  0x2f   : > { %698 = vset.pattern.permute.xlu2 %v777_v31 }
  0x30   : > { %243 = vmatpush.msra.mxu0 %v216_v41 }
  0x32   : > { %244 = vmatpush.msra.mxu0 %v215_v42 }
  0x33   : > { %600 = vmatmul.msk.f32.vlgmr.msra.gmra.mxu0 %vm225_vm0, %v214_v43 }
  0xa8   : > { %v282_v44 = vpop.f32.mrf.mxu1 }
  0xa9   : > { %358 = vrot.lane.b32.xlu0 %v282_v44, %s765_s6  ;;  %v778_v44 = vmov 0.0  }
  0xae   : > { %v318_v45 = vpop.f32.mrf.mxu2 }
  0xb0   : > { %v354_v46 = vpop.f32.mrf.mxu3  ;;  %v246_v48 = vpop.f32.mrf.mxu0 }
  0xb1   : > { %362 = vrot.lane.b32.xlu0 %v318_v45, %s766_s7  ;;  %366 = vrot.lane.b32.xlu1 %v354_v46, %s767_s8  ;;  %s502_s7 = scalar_lea.hbm %s996_s3, %s639_s4  ;;  %s195_s8 = scalar_lea.vmem [#allocation2], %s594_s30 }
 0x11b   : > { %v359_v47 = vpop.permute.xlu0 %358 }
 0x11c   : > { %v370_v49 = vsel %vm369_vm1, %v246_v48, %v359_v47 }
 0x123   : > { %v363_v50 = vpop.permute.xlu0 %362  ;;  %v367_v51 = vpop.permute.xlu1 %366 }
 0x124   : > { %v372_v52 = vsel %vm371_vm2, %v370_v49, %v363_v50 }
 0x125   : > { %v374_v53 = vsel %vm373_vm3, %v372_v52, %v367_v51 }
 0x126   : > { %390 = vrot.lane.b32.xlu1 %v374_v53, %s768_s9 }
 0x198   : > { %v391_v57 = vpop.permute.xlu1 %390 }
 0x199   : > { %v394_v58 = vsel %vm393_vm4, %v391_v57, -inf }
 0x19a   : > { %v395_v59 = vmax.f32 %v374_v53, %v394_v58 }
 0x19c   : > { %397 = vrot.lane.b32.xlu2 %v395_v59, %s769_s10 }
 0x1f6   : > { %v398_v60 = vpop.permute.xlu2 %397 }
 0x1f7   : > { %v401_v61 = vsel %vm400_vm5, %v398_v60, -inf }
 0x1f8   : > { %v402_v62 = vmax.f32 %v395_v59, %v401_v61 }
 0x1fa   : > { %404 = vrot.lane.b32.xlu2 %v402_v62, %s770_s11 }
 0x254   : > { %v405_v63 = vpop.permute.xlu2 %404 }
 0x255   : > { %v408_v0 = vsel %vm407_vm6, %v405_v63, -inf }
 0x256   : > { %v409_v1 = vmax.f32 %v402_v62, %v408_v0 }
 0x258   : > { %411 = vrot.lane.b32.xlu0 %v409_v1, %s771_s17 }
 0x2ca   : > { %v412_v3 = vpop.permute.xlu0 %411 }
 0x2cb   : > { %v416_v4 = vsel %vm415_vm7, %v412_v3, -inf }
 0x2cc   : > { %v417_v5 = vmax.f32 %v409_v1, %v416_v4 }
 0x2ce   : > { %419 = vrot.lane.b32.xlu1 %v417_v5, %s772_s19 }
 0x340   : > { %v420_v7 = vpop.permute.xlu1 %419 }
 0x341   : > { %v424_v8 = vsel %vm423_vm8, %v420_v7, -inf }
 0x342   : > { %v425_v9 = vmax.f32 %v417_v5, %v424_v8 }
 0x344   : > { %427 = vrot.lane.b32.xlu2 %v425_v9, %s773_s20 }
 0x39e   : > { %v428_v11 = vpop.permute.xlu2 %427 }
 0x39f   : > { %v432_v12 = vsel %vm431_vm9, %v428_v11, -inf }
 0x3a0   : > { %v433_v13 = vmax.f32 %v425_v9, %v432_v12 }
 0x3a2   : > { %vm434_vm10 = vcmp.eq.f32.partialorder %v374_v53, %v433_v13 }
 0x3a3   : > { %v435_v14 = vsel %vm434_vm10, %v914_v56, 8 }
 0x3a4   : > { %436 = vrot.lane.b32.xlu0 %v435_v14, %s768_s9  ;;  %s504_s9 = sshll.u32 %s195_s8, 4  ;;  %s505_s9 = int_to_ptr.vmem [resolvable:$true] %s504_s9 }
 0x416   : > { %v437_v15 = vpop.permute.xlu0 %436 }
 0x417   : > { %v438_v16 = vsel %vm393_vm4, %v437_v15, 8 }
 0x418   : > { %vm439_vm11 = vcmp.lt.s32.totalorder %v435_v14, %v438_v16 }
 0x419   : > { %v440_v17 = vsel %vm439_vm11, %v435_v14, %v438_v16 }
 0x41a   : > { %441 = vrot.lane.b32.xlu1 %v440_v17, %s769_s10  ;;  %s506_s10 = sshll.u32 %s502_s7, 4  ;;  %s507_s10 = int_to_ptr.hbm [resolvable:$true] %s506_s10 }
 0x48c   : > { %v442_v18 = vpop.permute.xlu1 %441 }
 0x48d   : > { %v443_v19 = vsel %vm400_vm5, %v442_v18, 8 }
 0x48e   : > { %vm444_vm12 = vcmp.lt.s32.totalorder %v440_v17, %v443_v19 }
 0x48f   : > { %v445_v20 = vsel %vm444_vm12, %v440_v17, %v443_v19 }
 0x490   : > { %446 = vrot.lane.b32.xlu2 %v445_v20, %s770_s11  ;;  %s715_s11 = sshra.s32 %s507_s10, 4  ;;  %s716_s11 = int_to_ptr.hbm [resolvable:$true] %s715_s11 }
 0x491   : > { %p722_p1 = scmp.lt.s32.totalorder %s716_s11, %s996_s3 }
 0x4ea   : > { %v447_v21 = vpop.permute.xlu2 %446 }
 0x4eb   : > { %v448_v22 = vsel %vm407_vm6, %v447_v21, 8 }
 0x4ec   : > { %vm449_vm13 = vcmp.lt.s32.totalorder %v445_v20, %v448_v22 }
 0x4ed   : > { %v450_v23 = vsel %vm449_vm13, %v445_v20, %v448_v22 }
 0x4ee   : > { %451 = vrot.lane.b32.xlu0 %v450_v23, %s771_s17  ;;  %s717_s17 = scalar_lea.hbm %s716_s11, 8 }
 0x4ef   : > { %p718_p12 = scmp.ne.s32.totalorder %s716_s11, %s717_s17  ;;  %p723_p2 = scmp.lt.s32.totalorder %s721_s24, %s717_s17 }
 0x4f1   : > { %p719_p13 = pnand %p718_p12, %p837_p5  ;;  %p724_p3 = por %p723_p2, %p722_p1 }
 0x4f3   : > { %p720_p0 = pneg %p719_p13 }
 0x4f5   : > { %p725_p4 = pnand %p724_p3, %p720_p0 }
 0x4f6   : > { %471 = vperm.xlu0 %696, %v213_v24  }
 0x4fe   : > { %700 = vset.pattern.permute.xlu0 %v776_v27 }
 0x560   : > { %v452_v28 = vpop.permute.xlu0 %451 }
 0x561   : > { %v453_v29 = vsel %vm415_vm7, %v452_v28, 8 }
 0x562   : > { %vm454_vm14 = vcmp.lt.s32.totalorder %v450_v23, %v453_v29 }
 0x563   : > { %v455_v30 = vsel %vm454_vm14, %v450_v23, %v453_v29 }
 0x564   : > { %456 = vrot.lane.b32.xlu1 %v455_v30, %s772_s19 }
 0x568   : > { %v472_v39 = vpop.permute.xlu0 %471 }
 0x56c   : > { %475 = vperm.xlu1 %697, %v213_v24  }
 0x574   : > { %699 = vset.pattern.permute.xlu1 %v776_v27 }
 0x575   : > { %483 = vperm.xlu1 %699, %v213_v24  }
 0x5d6   : > { %v457_v32 = vpop.permute.xlu1 %456 }
 0x5d7   : > { %v458_v33 = vsel %vm423_vm8, %v457_v32, 8 }
 0x5d8   : > { %vm459_vm15 = vcmp.lt.s32.totalorder %v455_v30, %v458_v33 }
 0x5d9   : > { %v460_v34 = vsel %vm459_vm15, %v455_v30, %v458_v33 }
 0x5da   : > { %461 = vrot.lane.b32.xlu2 %v460_v34, %s773_s20 }
 0x5de   : > { %v476_v35 = vpop.permute.xlu1 %475 }
 0x5df   : > { %v486_v41 = vsel %vm369_vm1, %v472_v39, %v476_v35 }
 0x5e2   : > { %479 = vperm.xlu2 %698, %v213_v24  }
 0x5e7   : > { %v484_v40 = vpop.permute.xlu1 %483 }
 0x634   : > { %v462_v36 = vpop.permute.xlu2 %461 }
 0x635   : > { %v463_v37 = vsel %vm431_vm9, %v462_v36, 8 }
 0x636   : > { %vm464_vm0 = vcmp.lt.s32.totalorder %v460_v34, %v463_v37 }
 0x637   : > { %v465_v38 = vsel %vm464_vm0, %v460_v34, %v463_v37 }
 0x638   : > { %vm466_vm4 = vcmp.eq.s32.totalorder %v914_v56, %v465_v38 }
 0x639   : > { %v637_v45 = vsel %vm466_vm4, 1.0, %v778_v44 }
 0x63c   : > { %v480_v42 = vpop.permute.xlu2 %479 }
 0x63d   : > { %v487_v43 = vsel %vm371_vm2, %v486_v41, %v480_v42 }
 0x63e   : > { %v488_v46 = vsel %vm373_vm3, %v487_v43, %v484_v40 }
 0x63f   : > { %v489_v47 = vmul.f32 %v637_v45, %v488_v46 }
 0x641   : > { %490 = vst [vmem:[%s195_s8] sm:$0xff] %v489_v47 }
 0x642   : > { %728 = shalt.err (!%p725_p4)
}
 0x643   : > { %643 = dma.vmem_to_hbm [thread:$0]  (%p837_p5), %s505_s9, 128, %s507_s10, %s492_s16  }
 0x644 PF: > { %p649_p7 = scmp.ge.s32.totalorder %s763_s15, 2  ;;  %s518_s27 = sand.u32 1, %s751_s12  }
 0x645   : > { %s519_s28 = scalar_lea.sflag [#allocation3], %s518_s27 }
 0x646   : > { %p646_p8 = pnand %p649_p7, %p841_p6 }
 0x648   : > { %p647_p9 = pneg %p646_p8 }
 0x64a   : > { %746 = dma.done.wait (%p647_p9), %s519_s28, 128  }
 0x64b   : > { %748 = vsyncadd (%p647_p9), %s519_s28, 4294967168  ;;  %p13_p10 = scmp.ge.s32.totalorder %s824_s18, 4   ;;  %s999_s12 = smov %s755_s13 }
 0x64c   : > { %s1000_s13 = smov %s759_s14  ;;  %s1001_s14 = smov %s835_s21 }
 0x64d   : > { %s1002_s15 = smov %s824_s18  ;;  %15 = sbr.rel (!%p13_p10) target bundleno = 3 (0x3), region = 79 }
 0x652   :  { %525 = vsyncpa [#allocation3], 1 }
 0x653   :  { %527 = vsyncpa [#allocation3 + $0x1], 1 }

</bundles_post_ra>
